<compile_context>
chip_gen: v7x
topology: tpu7x:2x2x1
jax: 0.10.0
libtpu: 0.0.40
codegen_flags: <defaults>
</compile_context>

<pallas_src>
import math
import functools

import jax
import jax.numpy as jnp
from jax.experimental import pallas as pl
from jax.experimental.pallas import tpu as pltpu

_BN_EPS = 1e-5


def _round_up(x: int, m: int) -> int:
    return (x + m - 1) // m * m


def _nbytes(a) -> int:
    return math.prod(a.shape) * jnp.dtype(a.dtype).itemsize


def _device_vmem_bytes() -> int:
    """Physical VMEM of the local TPU (conservative 64 MiB fallback)."""
    try:
        return int(pltpu.get_tpu_info().vmem_capacity_bytes)
    except Exception:
        return 64 * 1024 * 1024


# --------------------------------------------------------------------------- #
# Kernel
# --------------------------------------------------------------------------- #
def _make_mlp_kernel(num_layers: int):
    """Fused body: chain of (bf16 MXU matmul -> f32 bias -> ReLU -> bf16),
    no ReLU after the final layer.  BatchNorm already folded into weights;
    dropout (eval mode) is identity."""

    def kernel(*refs):
        x_ref = refs[0]
        out_ref = refs[-1]
        params = refs[1:-1]          # (w0, b0, w1, b1, ..., w_{L-1}, b_{L-1})

        h = x_ref[...]               # bf16 activation tile (TB, in_pad)
        for l in range(num_layers):
            w = params[2 * l][...]           # bf16, (in_pad_l, out_pad_l)
            b = params[2 * l + 1][...]       # f32,  (1, out_pad_l)
            acc = jnp.dot(h, w, preferred_element_type=jnp.float32) + b
            if l < num_layers - 1:
                h = jnp.maximum(acc, 0.0).astype(jnp.bfloat16)
            else:
                out_ref[...] = acc.astype(out_ref.dtype)

    return kernel


# --------------------------------------------------------------------------- #
# Parameter init (matches the PyTorch module's __init__)
# --------------------------------------------------------------------------- #
def init_mlp_params(key, n_inputs, n_hidden, n_classes, use_batch_norm=True):
    """kaiming_normal_ weights, PyTorch-default Linear biases, BN defaults."""
    dims = [n_inputs] + list(n_hidden) + [n_classes]
    linears, bns = [], []
    keys = jax.random.split(key, len(dims) - 1)
    for l in range(len(dims) - 1):
        fan_in, fan_out = dims[l], dims[l + 1]
        kw, kb = jax.random.split(keys[l])
        std = math.sqrt(2.0 / fan_in)            # kaiming_normal_, gain=sqrt(2)
        w = std * jax.random.normal(kw, (fan_in, fan_out), dtype=jnp.float32)
        bound = 1.0 / math.sqrt(fan_in)
        b = jax.random.uniform(kb, (fan_out,), jnp.float32, -bound, bound)
        linears.append((w, b))
        if use_batch_norm and l < len(dims) - 2:
            feat = fan_out
            bns.append((jnp.ones((feat,), jnp.float32),    # gamma
                        jnp.zeros((feat,), jnp.float32),   # beta
                        jnp.zeros((feat,), jnp.float32),   # running_mean
                        jnp.ones((feat,), jnp.float32)))   # running_var
    return {"linears": linears, "bns": bns}


# --------------------------------------------------------------------------- #
# Host-side prep: fold BN into Linear, pad features to 128, cast weights bf16
# --------------------------------------------------------------------------- #
def prepare_kernel_params(params, use_batch_norm):
    linears, bns = params["linears"], params["bns"]
    n_layers = len(linears)
    flat = []
    for l, (w, b) in enumerate(linears):
        fan_in, fan_out = w.shape
        if use_batch_norm and l < n_layers - 1:
            gamma, beta, mean, var = bns[l]
            scale = gamma * jax.lax.rsqrt(var + _BN_EPS)
            w = w * scale[None, :]
            b = (b - mean) * scale + beta
        in_pad = _round_up(fan_in, 128)
        out_pad = _round_up(fan_out, 128)
        w_p = jnp.zeros((in_pad, out_pad), jnp.float32).at[:fan_in, :fan_out].set(w)
        b_p = jnp.zeros((1, out_pad), jnp.float32).at[0, :fan_out].set(b)
        flat += [w_p.astype(jnp.bfloat16), b_p]   # bf16 weights, f32 biases
    return flat


# --------------------------------------------------------------------------- #
# Forward pass
# --------------------------------------------------------------------------- #
@functools.partial(jax.jit,
                   static_argnames=("n_classes", "batch_tile", "out_dtype"))
def mlp_forward(x, flat_params, *, n_classes, batch_tile=256,
                out_dtype=jnp.bfloat16):
    B, F_in = x.shape
    num_layers = len(flat_params) // 2
    in_pad = flat_params[0].shape[0]
    out_pad = flat_params[-1].shape[-1]

    # Batch tile: multiple of 16 (bf16 sublane packing).  Default 256 rows
    # fills the 256-wide MXU on v6e/v7x and amortizes per-step overhead.
    TB = _round_up(min(batch_tile, _round_up(B, 16)), 16)
    B_pad = _round_up(B, TB)
    # Guarantee >=2 grid steps (when the batch allows it) so the "parallel"
    # batch axis actually shards across the two v7x TensorCores.
    if B_pad // TB < 2 and B_pad >= 32:
        TB = _round_up((B_pad + 1) // 2, 16)
        B_pad = _round_up(B, TB)

    # Single fused pad+cast to bf16 (skipped entirely when already aligned):
    # the input is written to HBM at most once, in bf16.
    if B_pad == B and in_pad == F_in:
        x_pad = x if x.dtype == jnp.bfloat16 else x.astype(jnp.bfloat16)
    else:
        x_pad = jnp.zeros((B_pad, in_pad), jnp.bfloat16).at[:B, :F_in].set(
            x.astype(jnp.bfloat16))

    # Specs: activations tiled over batch (double-buffered by default;
    # sweep pl.Buffered(3) if the per-step DMA is exposed), weights/biases
    # VMEM-resident and single-buffered.
    def resident_spec(shape):
        try:
            return pl.BlockSpec(shape, lambda i: (0, 0),
                                pipeline_mode=pl.Buffered(1))
        except TypeError:   # older jax without pipeline_mode kwarg
            return pl.BlockSpec(shape, lambda i: (0, 0))

    in_specs = [pl.BlockSpec((TB, in_pad), lambda i: (i, 0))]
    in_specs += [resident_spec(p.shape) for p in flat_params]
    out_specs = pl.BlockSpec((TB, out_pad), lambda i: (i, 0))

    # Advisory cost estimate for XLA's scheduler.
    flops = 2 * B_pad * sum(flat_params[2 * l].shape[0] * flat_params[2 * l].shape[1]
                            for l in range(num_layers))
    out_isz = jnp.dtype(out_dtype).itemsize
    bytes_accessed = (_nbytes(x_pad) + B_pad * out_pad * out_isz
                      + sum(_nbytes(p) for p in flat_params))
    cost = pl.CostEstimate(flops=flops, transcendentals=0,
                           bytes_accessed=bytes_accessed)

    # VMEM: resident weights (x1) + double-buffered bf16 activation tiles,
    # with headroom, clamped to the device's physical VMEM.
    weight_bytes = sum(_nbytes(p) for p in flat_params)
    act_bytes = 2 * TB * in_pad * 2 + 2 * TB * out_pad * out_isz
    required = weight_bytes + act_bytes
    vmem_cap = _device_vmem_bytes()
    vmem_limit = int(min(max(32 << 20, required + (8 << 20)),
                         vmem_cap - (2 << 20)))
    # TODO(synk): if `required` exceeds the device budget, switch to the
    #             K-tiled weight-streaming plan instead of the resident plan.

    out = pl.pallas_call(
        _make_mlp_kernel(num_layers),
        out_shape=jax.ShapeDtypeStruct((B_pad, out_pad), out_dtype),
        grid=(B_pad // TB,),
        in_specs=in_specs,
        out_specs=out_specs,
        compiler_params=pltpu.CompilerParams(
            dimension_semantics=("parallel",),
            vmem_limit_bytes=vmem_limit),
        cost_estimate=cost,
    )(x_pad, *flat_params)

    return out[:B, :n_classes]


# --------------------------------------------------------------------------- #
# References
# --------------------------------------------------------------------------- #
def mlp_reference_bf16(x, flat_params, n_classes, out_dtype=jnp.bfloat16):
    """Mirrors the kernel numerics (folded BN, padding, bf16 activations,
    bf16 MXU matmuls with f32 accumulation)."""
    in_pad = flat_params[0].shape[0]
    B, F_in = x.shape
    h = jnp.zeros((B, in_pad), jnp.bfloat16).at[:, :F_in].set(
        x.astype(jnp.bfloat16))
    num_layers = len(flat_params) // 2
    for l in range(num_layers):
        w, b = flat_params[2 * l], flat_params[2 * l + 1]
        acc = jnp.dot(h, w, preferred_element_type=jnp.float32) + b
        if l < num_layers - 1:
            h = jnp.maximum(acc, 0.0).astype(jnp.bfloat16)
        else:
            h = acc.astype(out_dtype)
    return h[:, :n_classes]


def mlp_reference_f32(x, params, use_batch_norm):
    """Pure-f32, unfused eval-mode reference of the original module."""
    linears, bns = params["linears"], params["bns"]
    h = x.astype(jnp.float32)
    n_layers = len(linears)
    for l, (w, b) in enumerate(linears):
        h = h @ w + b
        if l < n_layers - 1:
            if use_batch_norm:
                gamma, beta, mean, var = bns[l]
                h = (h - mean) / jnp.sqrt(var + _BN_EPS) * gamma + beta
            h = jnp.maximum(h, 0.0)   # dropout (eval) = identity
    return h


# --------------------------------------------------------------------------- #
if __name__ == "__main__":
    batch = 8
    n_inputs = 64
    n_hidden = [32, 32]
    n_classes = 10
    use_batch_norm = True

    key = jax.random.PRNGKey(0)
    kx, kp = jax.random.split(key)
    x = jax.random.normal(kx, (batch, n_inputs), dtype=jnp.float32)

    params = init_mlp_params(kp, n_inputs, n_hidden, n_classes,
                             use_batch_norm=use_batch_norm)
    flat_params = prepare_kernel_params(params, use_batch_norm)

    out = mlp_forward(x, flat_params, n_classes=n_classes)
    out = jax.block_until_ready(out)
    assert out.shape == (batch, n_classes)

    # Tight check against a reference mirroring the kernel numerics exactly.
    ref_bf16 = mlp_reference_bf16(x, flat_params, n_classes)
    assert jnp.allclose(out.astype(jnp.float32), ref_bf16.astype(jnp.float32),
                        atol=2e-3, rtol=2e-3), "mismatch vs bf16 folded reference"

    # Semantic check against the unfused f32 eval-mode module (bf16 tolerance).
    ref_f32 = mlp_reference_f32(x, params, use_batch_norm)
    assert jnp.allclose(out.astype(jnp.float32), ref_f32,
                        atol=5e-2, rtol=5e-2), "mismatch vs f32 module reference"

    print("KERNEL_OK")
</pallas_src>

<mosaic_0001>
module attributes {stable_mosaic.version = 11 : i64} {
  func.func @kernel(%arg0: i32, %arg1: memref<16x128xbf16, #tpu.memory_space<vmem>>, %arg2: memref<128x128xbf16, #tpu.memory_space<vmem>>, %arg3: memref<1x128xf32, #tpu.memory_space<vmem>>, %arg4: memref<128x128xbf16, #tpu.memory_space<vmem>>, %arg5: memref<1x128xf32, #tpu.memory_space<vmem>>, %arg6: memref<128x128xbf16, #tpu.memory_space<vmem>>, %arg7: memref<1x128xf32, #tpu.memory_space<vmem>>, %arg8: memref<16x128xbf16, #tpu.memory_space<vmem>>) attributes {dimension_semantics = [#tpu.dimension_semantics<parallel>], iteration_bounds = array<i64: 1>, scalar_prefetch = 0 : i64, scratch_operands = 0 : i64, tpu.core_type = #tpu.core_type<tc>, window_params = [{transform_indices = @transform_0, window_bounds = array<i64: 16, 128>}, {pipeline_mode = #tpu.pipeline_mode<synchronous>, transform_indices = @transform_1, window_bounds = array<i64: 128, 128>}, {pipeline_mode = #tpu.pipeline_mode<synchronous>, transform_indices = @transform_2, window_bounds = array<i64: 1, 128>}, {pipeline_mode = #tpu.pipeline_mode<synchronous>, transform_indices = @transform_3, window_bounds = array<i64: 128, 128>}, {pipeline_mode = #tpu.pipeline_mode<synchronous>, transform_indices = @transform_4, window_bounds = array<i64: 1, 128>}, {pipeline_mode = #tpu.pipeline_mode<synchronous>, transform_indices = @transform_5, window_bounds = array<i64: 128, 128>}, {pipeline_mode = #tpu.pipeline_mode<synchronous>, transform_indices = @transform_6, window_bounds = array<i64: 1, 128>}, {transform_indices = @transform_7, window_bounds = array<i64: 16, 128>}]} {
    %c0 = arith.constant 0 : index
    %c0_0 = arith.constant 0 : index
    %0 = vector.load %arg1[%c0, %c0_0] : memref<16x128xbf16, #tpu.memory_space<vmem>>, vector<16x128xbf16>
    %c0_1 = arith.constant 0 : index
    %c0_2 = arith.constant 0 : index
    %1 = vector.load %arg2[%c0_1, %c0_2] : memref<128x128xbf16, #tpu.memory_space<vmem>>, vector<128x128xbf16>
    %c0_3 = arith.constant 0 : index
    %c0_4 = arith.constant 0 : index
    %2 = vector.load %arg3[%c0_3, %c0_4] : memref<1x128xf32, #tpu.memory_space<vmem>>, vector<1x128xf32>
    %cst = arith.constant dense<0.000000e+00> : vector<16x128xf32>
    %3 = tpu.matmul %0, %1, %cst {dimension_numbers = #tpu.dot_dimension_numbers<[1], [0], [0], [1], [0, 0, 1, 1], [], []>} : vector<16x128xbf16>, vector<128x128xbf16>, vector<16x128xf32> -> vector<16x128xf32>
    %4 = vector.broadcast %2 : vector<1x128xf32> to vector<16x128xf32>
    %5 = arith.addf %3, %4 : vector<16x128xf32>
    %cst_5 = arith.constant 0.000000e+00 : f32
    %6 = vector.broadcast %cst_5 : f32 to vector<16x128xf32>
    %7 = arith.maximumf %5, %6 : vector<16x128xf32>
    %8 = arith.truncf %7 : vector<16x128xf32> to vector<16x128xbf16>
    %c0_6 = arith.constant 0 : index
    %c0_7 = arith.constant 0 : index
    %9 = vector.load %arg4[%c0_6, %c0_7] : memref<128x128xbf16, #tpu.memory_space<vmem>>, vector<128x128xbf16>
    %c0_8 = arith.constant 0 : index
    %c0_9 = arith.constant 0 : index
    %10 = vector.load %arg5[%c0_8, %c0_9] : memref<1x128xf32, #tpu.memory_space<vmem>>, vector<1x128xf32>
    %cst_10 = arith.constant dense<0.000000e+00> : vector<16x128xf32>
    %11 = tpu.matmul %8, %9, %cst_10 {dimension_numbers = #tpu.dot_dimension_numbers<[1], [0], [0], [1], [0, 0, 1, 1], [], []>} : vector<16x128xbf16>, vector<128x128xbf16>, vector<16x128xf32> -> vector<16x128xf32>
    %12 = vector.broadcast %10 : vector<1x128xf32> to vector<16x128xf32>
    %13 = arith.addf %11, %12 : vector<16x128xf32>
    %cst_11 = arith.constant 0.000000e+00 : f32
    %14 = vector.broadcast %cst_11 : f32 to vector<16x128xf32>
    %15 = arith.maximumf %13, %14 : vector<16x128xf32>
    %16 = arith.truncf %15 : vector<16x128xf32> to vector<16x128xbf16>
    %c0_12 = arith.constant 0 : index
    %c0_13 = arith.constant 0 : index
    %17 = vector.load %arg6[%c0_12, %c0_13] : memref<128x128xbf16, #tpu.memory_space<vmem>>, vector<128x128xbf16>
    %c0_14 = arith.constant 0 : index
    %c0_15 = arith.constant 0 : index
    %18 = vector.load %arg7[%c0_14, %c0_15] : memref<1x128xf32, #tpu.memory_space<vmem>>, vector<1x128xf32>
    %cst_16 = arith.constant dense<0.000000e+00> : vector<16x128xf32>
    %19 = tpu.matmul %16, %17, %cst_16 {dimension_numbers = #tpu.dot_dimension_numbers<[1], [0], [0], [1], [0, 0, 1, 1], [], []>} : vector<16x128xbf16>, vector<128x128xbf16>, vector<16x128xf32> -> vector<16x128xf32>
    %20 = vector.broadcast %18 : vector<1x128xf32> to vector<16x128xf32>
    %21 = arith.addf %19, %20 : vector<16x128xf32>
    %22 = arith.truncf %21 : vector<16x128xf32> to vector<16x128xbf16>
    %c0_17 = arith.constant 0 : index
    %c0_18 = arith.constant 0 : index
    %23 = vector.load %arg8[%c0_17, %c0_18] : memref<16x128xbf16, #tpu.memory_space<vmem>>, vector<16x128xbf16>
    tpu.vector_store %arg8[%c0_17, %c0_18], %22 {strides = array<i32>} : memref<16x128xbf16, #tpu.memory_space<vmem>>, vector<16x128xbf16>,
    return
  }
  func.func @transform_0(%arg0: i32) -> (i32, i32) {
    %c0_i32 = arith.constant 0 : i32
    %c0_i32_0 = arith.constant 0 : i32
    return %arg0, %c0_i32 : i32, i32
  }
  func.func @transform_1(%arg0: i32) -> (i32, i32) {
    %c0_i32 = arith.constant 0 : i32
    %c0_i32_0 = arith.constant 0 : i32
    %c0_i32_1 = arith.constant 0 : i32
    return %c0_i32, %c0_i32_0 : i32, i32
  }
  func.func @transform_2(%arg0: i32) -> (i32, i32) {
    %c0_i32 = arith.constant 0 : i32
    %c0_i32_0 = arith.constant 0 : i32
    %c0_i32_1 = arith.constant 0 : i32
    return %c0_i32, %c0_i32_0 : i32, i32
  }
  func.func @transform_3(%arg0: i32) -> (i32, i32) {
    %c0_i32 = arith.constant 0 : i32
    %c0_i32_0 = arith.constant 0 : i32
    %c0_i32_1 = arith.constant 0 : i32
    return %c0_i32, %c0_i32_0 : i32, i32
  }
  func.func @transform_4(%arg0: i32) -> (i32, i32) {
    %c0_i32 = arith.constant 0 : i32
    %c0_i32_0 = arith.constant 0 : i32
    %c0_i32_1 = arith.constant 0 : i32
    return %c0_i32, %c0_i32_0 : i32, i32
  }
  func.func @transform_5(%arg0: i32) -> (i32, i32) {
    %c0_i32 = arith.constant 0 : i32
    %c0_i32_0 = arith.constant 0 : i32
    %c0_i32_1 = arith.constant 0 : i32
    return %c0_i32, %c0_i32_0 : i32, i32
  }
  func.func @transform_6(%arg0: i32) -> (i32, i32) {
    %c0_i32 = arith.constant 0 : i32
    %c0_i32_0 = arith.constant 0 : i32
    %c0_i32_1 = arith.constant 0 : i32
    return %c0_i32, %c0_i32_0 : i32, i32
  }
  func.func @transform_7(%arg0: i32) -> (i32, i32) {
    %c0_i32 = arith.constant 0 : i32
    %c0_i32_0 = arith.constant 0 : i32
    return %arg0, %c0_i32 : i32, i32
  }
}

</mosaic_0001>

<bundles_post_ra>
// kernel: mlp_forward.1
= control target key start
LH: loop header
LB: loop body
LE: loop exit
PB: predicated region body
PF: predicated region fallthrough
CT: control target
= control target key end

     0   :  { %12 = vsyncpa [#allocation3], 0  ;;  %s804_s0 = inlined_call_operand.vmem [shape: bf16[16,128], index: 0, kind: input, shape index: {}]   ;;  %s805_s1 = inlined_call_operand.hbm [shape: bf16[128,128], index: 1, kind: input, shape index: {}]   ;;  %s806_s2 = inlined_call_operand.vmem [shape: f32[1,128], index: 2, kind: input, shape index: {}]   ;;  %s807_s3 = inlined_call_operand.hbm [shape: bf16[128,128], index: 3, kind: input, shape index: {}]   ;;  %s808_s4 = inlined_call_operand.vmem [shape: f32[1,128], index: 4, kind: input, shape index: {}]   ;;  %s809_s5 = inlined_call_operand.hbm [shape: bf16[128,128], index: 5, kind: input, shape index: {}]   ;;  %s810_s6 = inlined_call_operand.vmem [shape: f32[1,128], index: 6, kind: input, shape index: {}]   ;;  %s811_s7 = inlined_call_operand.vmem [shape: bf16[16,128], index: 7, kind: output, shape index: {}]  }
   0x1   :  { %13 = vsyncpa [#allocation5], 0  ;;  %s660_s24 = smov [#allocation4]   ;;  %s661_s26 = smov [#allocation2]  }
   0x2   :  { %s35_s25 = sshll.u32 %s660_s24, 4  ;;  %s21_s27 = sshll.u32 %s661_s26, 4  ;;  %s36_s25 = int_to_ptr.vmem [resolvable:$true] %s35_s25  ;;  %s707_s27 = int_to_ptr.vmem [resolvable:$true] %s21_s27 }
   0x3   :  { %s590_s30 = scalar_lea.hbm %s807_s3, 1024 }
   0x4   :  { %p591_p0 = scmp.ne.s32.totalorder %s807_s3, %s590_s30  ;;  %p594_p1 = scmp.lt.u32.totalorder %s590_s30, %s807_s3 }
   0x6   :  { %p596_p2 = pnand %p594_p1, %p591_p0 }
   0x8   :  { %599 = shalt.err (!%p596_p2)
}
   0x9   :  { %s600_s12 = scalar_lea.vmem %s36_s25, 1024  ;;  %p605_p4 = scmp.lt.s32.totalorder %s36_s25, %s36_s25 }
   0xa   :  { %p601_p3 = scmp.ne.s32.totalorder %s36_s25, %s600_s12  ;;  %p606_p5 = scmp.lt.s32.totalorder %s600_s12, %s600_s12 }
   0xc   :  { %p607_p6 = por %p606_p5, %p605_p4 }
   0xe   :  { %p608_p7 = pnand %p607_p6, %p601_p3 }
  0x10   :  { %611 = shalt.err (!%p608_p7)
}
  0x11   :  { %s662_s13 = smov 64   ;;  %s663_s14 = smov 4  }
  0x12   :  { %41 = dma.hbm_to_vmem [thread:$0]  %s807_s3, 1024, %s36_s25, [#allocation5], %s662_s13, %s662_s13, %s663_s14  }
  0x13   :  { %s612_s19 = scalar_lea.hbm %s805_s1, 1024 }
  0x14   :  { %p613_p8 = scmp.ne.s32.totalorder %s805_s1, %s612_s19  ;;  %p616_p9 = scmp.lt.u32.totalorder %s612_s19, %s805_s1 }
  0x16   :  { %p618_p10 = pnand %p616_p9, %p613_p8 }
  0x18   :  { %621 = shalt.err (!%p618_p10)
}
  0x19   :  { %s622_s24 = scalar_lea.vmem %s707_s27, 1024  ;;  %p627_p12 = scmp.lt.s32.totalorder %s707_s27, %s707_s27 }
  0x1a   :  { %p623_p11 = scmp.ne.s32.totalorder %s707_s27, %s622_s24  ;;  %p628_p13 = scmp.lt.s32.totalorder %s622_s24, %s622_s24 }
  0x1c   :  { %p629_p0 = por %p628_p13, %p627_p12 }
  0x1e   :  { %p630_p1 = pnand %p629_p0, %p623_p11 }
  0x20   :  { %633 = shalt.err (!%p630_p1)
}
  0x21   :  { %27 = dma.hbm_to_vmem [thread:$0]  %s805_s1, 1024, %s707_s27, [#allocation3], %s662_s13, %s662_s13, %s663_s14  }
  0x22   :  { %s664_s26 = smov [#allocation6]   ;;  %s634_s8 = scalar_lea.hbm %s809_s5, 1024 }
  0x23   :  { %s49_s28 = sshll.u32 %s664_s26, 4  ;;  %p635_p2 = scmp.ne.s32.totalorder %s809_s5, %s634_s8  ;;  %s50_s28 = int_to_ptr.vmem [resolvable:$true] %s49_s28 }
  0x24   :  { %p638_p3 = scmp.lt.u32.totalorder %s634_s8, %s809_s5 }
  0x26   :  { %p640_p4 = pnand %p638_p3, %p635_p2 }
  0x28   :  { %643 = shalt.err (!%p640_p4)
}
  0x29   :  { %s644_s15 = scalar_lea.vmem %s50_s28, 1024  ;;  %p649_p6 = scmp.lt.s32.totalorder %s50_s28, %s50_s28 }
  0x2a   :  { %p645_p5 = scmp.ne.s32.totalorder %s50_s28, %s644_s15  ;;  %p650_p7 = scmp.lt.s32.totalorder %s644_s15, %s644_s15 }
  0x2c   :  { %p651_p8 = por %p650_p7, %p649_p6 }
  0x2e   :  { %p652_p9 = pnand %p651_p8, %p645_p5 }
  0x30   :  { %655 = shalt.err (!%p652_p9)
}
  0x31   :  { %55 = dma.hbm_to_vmem [thread:$0]  %s809_s5, 1024, %s50_s28, [#allocation5], %s662_s13, %s662_s13, %s663_s14  }
  0x32   :  { %656 = dma.done.wait [#allocation3], 1024  }
  0x33   :  { %657 = vsyncadd [#allocation3], 4294966272 }
  0x34   :  { %658 = dma.done.wait [#allocation5], 2048  }
  0x35   :  { %659 = vsyncadd [#allocation5], 4294965248  ;;  %v665_v0 = vmov 0.0   ;;  %vm666_vm0 = vmmov 0   ;;  %v565_v1 = vld [vmem:[#allocation2] sm:$0xff]   ;;  %v566_v2 = vld [vmem:[#allocation2 + $0x8] sm:$0xff]  }
  0x36   :  { %498 = vmatprep.subr.bf16.mxu0 %v665_v0  ;;  %514 = vmatprep.mubr.msk.bf16.mxu0 %vm666_vm0, %v665_v0  ;;  %v567_v3 = vld [vmem:[#allocation2 + $0x10] sm:$0xff]   ;;  %v574_v4 = vld [vmem:[#allocation4] sm:$0xff]   ;;  %v568_v5 = vld [vmem:[#allocation2 + $0x18] sm:$0xff]  }
  0x37   :  { %518 = vmatprep.subr.bf16.mxu1 %v665_v0  ;;  %534 = vmatprep.mubr.msk.bf16.mxu1 %vm666_vm0, %v665_v0  ;;  %v575_v6 = vld [vmem:[#allocation4 + $0x8] sm:$0xff]   ;;  %v569_v7 = vld [vmem:[#allocation2 + $0x20] sm:$0xff]   ;;  %v576_v8 = vld [vmem:[#allocation4 + $0x10] sm:$0xff]  }
  0x38   :  { %499 = vmatpush3.bf16.msra.mxu0 %v565_v1  ;;  %519 = vmatpush3.bf16.msra.mxu1 %v574_v4  ;;  %v570_v9 = vld [vmem:[#allocation2 + $0x28] sm:$0xff]   ;;  %v577_v10 = vld [vmem:[#allocation4 + $0x18] sm:$0xff]   ;;  %v571_v11 = vld [vmem:[#allocation2 + $0x30] sm:$0xff]  }
  0x39   :  { %500 = vmatprep.subr.bf16.mxu0 %v665_v0  ;;  %520 = vmatprep.subr.bf16.mxu1 %v665_v0  ;;  %v578_v12 = vld [vmem:[#allocation4 + $0x20] sm:$0xff]   ;;  %v572_v13 = vld [vmem:[#allocation2 + $0x38] sm:$0xff]   ;;  %v579_v14 = vld [vmem:[#allocation4 + $0x28] sm:$0xff]  }
  0x3a   :  { %v573_v15 = vld [vmem:[%s804_s0] sm:$0xff]   ;;  %v580_v16 = vld [vmem:[#allocation4 + $0x30] sm:$0xff]   ;;  %v581_v17 = vld [vmem:[#allocation4 + $0x38] sm:$0xff]  }
  0x3b   :  { %v582_v18 = vld [vmem:[#allocation6] sm:$0xff]   ;;  %v583_v19 = vld [vmem:[#allocation6 + $0x8] sm:$0xff]   ;;  %v584_v20 = vld [vmem:[#allocation6 + $0x10] sm:$0xff]  }
  0x3c   :  { %501 = vmatpush3.bf16.msra.mxu0 %v566_v2  ;;  %521 = vmatpush3.bf16.msra.mxu1 %v575_v6  ;;  %v585_v21 = vld [vmem:[#allocation6 + $0x18] sm:$0xff]   ;;  %v586_v22 = vld [vmem:[#allocation6 + $0x20] sm:$0xff]   ;;  %v587_v23 = vld [vmem:[#allocation6 + $0x28] sm:$0xff]  }
  0x3d   :  { %502 = vmatprep.subr.bf16.mxu0 %v665_v0  ;;  %522 = vmatprep.subr.bf16.mxu1 %v665_v0  ;;  %v434_v24 = vld [vmem:[%s806_s2] ss:$0 sm:$0xff]  ;;  %v588_v34 = vld [vmem:[#allocation6 + $0x30] sm:$0xff]   ;;  %v589_v35 = vld [vmem:[#allocation6 + $0x38] sm:$0xff]  }
  0x3e   :  { %v444_v36 = vld [vmem:[%s808_s4] ss:$0 sm:$0xff] }
  0x3f   :  { %v453_v46 = vld [vmem:[%s810_s6] ss:$0 sm:$0xff] }
  0x40   :  { %503 = vmatpush3.bf16.msra.mxu0 %v567_v3  ;;  %523 = vmatpush3.bf16.msra.mxu1 %v576_v8 }
  0x41   :  { %504 = vmatprep.subr.bf16.mxu0 %v665_v0  ;;  %524 = vmatprep.subr.bf16.mxu1 %v665_v0 }
  0x44   :  { %505 = vmatpush3.bf16.msra.mxu0 %v568_v5  ;;  %525 = vmatpush3.bf16.msra.mxu1 %v577_v10 }
  0x45   :  { %506 = vmatprep.subr.bf16.mxu0 %v665_v0  ;;  %526 = vmatprep.subr.bf16.mxu1 %v665_v0 }
  0x48   :  { %507 = vmatpush3.bf16.msra.mxu0 %v569_v7  ;;  %527 = vmatpush3.bf16.msra.mxu1 %v578_v12 }
  0x49   :  { %508 = vmatprep.subr.bf16.mxu0 %v665_v0  ;;  %528 = vmatprep.subr.bf16.mxu1 %v665_v0 }
  0x4c   :  { %509 = vmatpush3.bf16.msra.mxu0 %v570_v9  ;;  %529 = vmatpush3.bf16.msra.mxu1 %v579_v14 }
  0x4d   :  { %510 = vmatprep.subr.bf16.mxu0 %v665_v0  ;;  %530 = vmatprep.subr.bf16.mxu1 %v665_v0 }
  0x50   :  { %511 = vmatpush3.bf16.msra.mxu0 %v571_v11  ;;  %531 = vmatpush3.bf16.msra.mxu1 %v580_v16 }
  0x51   :  { %512 = vmatprep.subr.bf16.mxu0 %v665_v0  ;;  %532 = vmatprep.subr.bf16.mxu1 %v665_v0 }
  0x54   :  { %513 = vmatpush3.bf16.msra.mxu0 %v572_v13  ;;  %533 = vmatpush3.bf16.msra.mxu1 %v581_v17 }
  0x55   :  { %538 = vmatprep.subr.bf16.mxu0 %v665_v0 }
  0x57   :  { %515 = vmatmul.mubr.bf16.vlgmr.msra.gmra.mrb[0].mxu0 %v573_v15 }
  0x58   :  { %554 = vmatprep.mubr.msk.bf16.mxu0 %vm666_vm0, %v665_v0  ;;  %539 = vmatpush3.bf16.msra.mxu0 %v582_v18 }
  0x59   :  { %540 = vmatprep.subr.bf16.mxu0 %v665_v0 }
  0x5c   :  { %541 = vmatpush3.bf16.msra.mxu0 %v583_v19 }
  0x5d   :  { %542 = vmatprep.subr.bf16.mxu0 %v665_v0 }
  0x60   :  { %543 = vmatpush3.bf16.msra.mxu0 %v584_v20 }
  0x61   :  { %544 = vmatprep.subr.bf16.mxu0 %v665_v0 }
  0x64   :  { %545 = vmatpush3.bf16.msra.mxu0 %v585_v21 }
  0x65   :  { %546 = vmatprep.subr.bf16.mxu0 %v665_v0 }
  0x68   :  { %547 = vmatpush3.bf16.msra.mxu0 %v586_v22 }
  0x69   :  { %548 = vmatprep.subr.bf16.mxu0 %v665_v0 }
  0x6c   :  { %549 = vmatpush3.bf16.msra.mxu0 %v587_v23 }
  0x6d   :  { %550 = vmatprep.subr.bf16.mxu0 %v665_v0 }
  0x70   :  { %551 = vmatpush3.bf16.msra.mxu0 %v588_v34 }
  0x71   :  { %552 = vmatprep.subr.bf16.mxu0 %v665_v0 }
  0x74   :  { %553 = vmatpush3.bf16.msra.mxu0 %v589_v35 }
 0x12a   :  { %v181_v25 = vpop.f32.mrb[0].mxu0 }
 0x12b   :  { %v182_v26 = vadd.f32 %v434_v24, %v181_v25  ;;  %v516_v27 = vpop.f32.mrb[1].mxu0 }
 0x12c   :  { %v184_v28 = vpop.f32.mrb[2].mxu0 }
 0x12d   :  { %v185_v29 = vadd.f32 %v434_v24, %v184_v28  ;;  %v517_v30 = vpop.f32.mrb[3].mxu0  ;;  %v188_v31 = vmax.f32 %v182_v26, 0.0 }
 0x12f   :  { %v189_v32 = vmax.f32 %v185_v29, 0.0 }
 0x131   :  { %v190_v33 = vpack.c.bf16 %v189_v32, %v188_v31 }
 0x133   :  { %535 = vmatmul.mubr.bf16.vlgmr.msra.gmra.mrb[0].mxu1 %v190_v33 }
 0x206   :  { %v296_v37 = vpop.f32.mrb[0].mxu1 }
 0x207   :  { %v297_v38 = vadd.f32 %v444_v36, %v296_v37  ;;  %v536_v39 = vpop.f32.mrb[1].mxu1 }
 0x208   :  { %v299_v40 = vpop.f32.mrb[2].mxu1 }
 0x209   :  { %v300_v41 = vadd.f32 %v444_v36, %v299_v40  ;;  %v537_v42 = vpop.f32.mrb[3].mxu1  ;;  %v303_v43 = vmax.f32 %v297_v38, 0.0 }
 0x20b   :  { %v304_v44 = vmax.f32 %v300_v41, 0.0 }
 0x20d   :  { %v305_v45 = vpack.c.bf16 %v304_v44, %v303_v43 }
 0x20f   :  { %555 = vmatmul.mubr.bf16.vlgmr.msra.gmra.mrb[4].mxu0 %v305_v45 }
 0x2e2   :  { %v411_v47 = vpop.f32.mrb[4].mxu0 }
 0x2e3   :  { %v556_v48 = vpop.f32.mrb[5].mxu0  ;;  %v412_v50 = vadd.f32 %v453_v46, %v411_v47 }
 0x2e4   :  { %v414_v49 = vpop.f32.mrb[6].mxu0 }
 0x2e5   :  { %v415_v51 = vadd.f32 %v453_v46, %v414_v49  ;;  %v557_v52 = vpop.f32.mrb[7].mxu0 }
 0x2e7   :  { %v469_v53 = vpack.c.bf16 %v415_v51, %v412_v50 }
 0x2e9   :  { %470 = vst [vmem:[%s811_s7] sm:$0xff] %v469_v53  }
 0x2ea   :  { %432 = vsyncpa [#allocation3], 1 }
 0x2eb   :  { %433 = vsyncpa [#allocation5], 1 }

</bundles_post_ra>
